<compile_context>
chip_gen: v7x
topology: tpu7x:2x2x1
jax: 0.10.0
libtpu: 0.0.40
codegen_flags: <defaults>
</compile_context>

<pallas_src>
import functools

import jax
import jax.numpy as jnp
from jax.experimental import pallas as pl
from jax.experimental.pallas import tpu as pltpu


# ---------------------------------------------------------------------------
# Kernel
# ---------------------------------------------------------------------------

def _roll_lanes(x, shift, width, use_xlu):
    """Circular shift along the last (lane) axis by a *static* amount."""
    shift = shift % width
    if shift == 0:
        return x
    if use_xlu:
        return pltpu.roll(x, shift, axis=1)      # XLU slot: effectively free
    # Tiny-tile fallback (width not a multiple of 128): slice + concat.
    return jnp.concatenate([x[:, width - shift:], x[:, :width - shift]], axis=1)


def _conv1d_kernel(x_ref, halo_ref, w_ref, b_ref, o_ref, *,
                   K, dilation, pad, TL, C_out):
    """One (batch, L-tile) grid step.

    x_ref:    (1, C_in, TL)          current L tile of the input
    halo_ref: (B*NL, C_in, 2*pad)    VMEM-resident halos [left | right] per tile
    w_ref:    (K, C_out, C_in)       VMEM-resident folded weight (tap-major)
    b_ref:    (C_out, 1)             VMEM-resident bias
    o_ref:    (1, C_out, TL)
    """
    b = pl.program_id(0)
    l = pl.program_id(1)
    nl = pl.num_programs(1)

    xc = x_ref[0]                                  # (C_in, TL)
    C_in = xc.shape[0]
    use_xlu = (TL % 128 == 0)

    if pad > 0:
        halo = halo_ref[b * nl + l]                # (C_in, 2*pad)
        lane = jax.lax.broadcasted_iota(jnp.int32, (C_in, TL), 1)

    acc = jnp.zeros((C_out, TL), jnp.float32)
    for k in range(K):                             # static unroll (K small)
        shift = pad - k * dilation                 # static Python int
        shifted = _roll_lanes(xc, shift, TL, use_xlu)
        if shift > 0:
            # First `shift` lanes wrapped around -> splice in left-halo columns.
            for t in range(shift):
                j = pad - shift + t
                col = halo[:, j:j + 1]             # (C_in, 1)
                shifted = jnp.where(lane == t, col, shifted)
        elif shift < 0:
            # Last `-shift` lanes wrapped around -> splice in right-halo columns.
            s = -shift
            for t in range(s):
                col = halo[:, pad + t:pad + t + 1]
                shifted = jnp.where(lane == TL - s + t, col, shifted)
        acc = acc + jnp.dot(w_ref[k], shifted,
                            preferred_element_type=jnp.float32)

    o_ref[0] = (acc + b_ref[...].astype(jnp.float32)).astype(o_ref.dtype)


# ---------------------------------------------------------------------------
# Wrapper helpers
# ---------------------------------------------------------------------------

def _tpu_vmem_bytes():
    """Physical per-core VMEM; conservative 64 MiB fallback if unknown."""
    try:
        info = pltpu.get_tpu_info()
    except Exception:
        return 64 * 1024 * 1024
    for attr in ("vmem_capacity_bytes", "vmem_bytes", "vmem_size_bytes"):
        v = getattr(info, attr, None)
        if v:
            return int(v)
    return 64 * 1024 * 1024


def _pick_tile_l(L, bytes_per_col, vmem_limit, min_tiles=1,
                 target_step_bytes=2 * 1024 * 1024):
    """Largest multiple of 128 dividing L, sized for >=~2 MiB/step and VMEM."""
    if L <= 128 or L % 128 != 0:
        return L                                   # whole-L block (tiny seqs)
    want = max(1024, -(-target_step_bytes // bytes_per_col))
    # Double-buffered x + out blocks must stay well under the scoped limit.
    vmem_cap = max(128, vmem_limit // (4 * bytes_per_col))
    cap = min(want, vmem_cap, L)
    if min_tiles > 1 and L >= 128 * min_tiles:
        cap = min(cap, L // min_tiles)
    cap = max(128, (cap // 128) * 128)
    best = 128
    tl = 128
    while tl <= cap:
        if L % tl == 0:
            best = tl
        tl += 128
    return best


def _build_halos(x, TL, pad):
    """Per-tile boundary columns, (B*NL, C_in, 2*pad), vectorized (no NL loop).

    Column block [0, pad)      = left halo  (right edge of the previous tile)
    Column block [pad, 2*pad)  = right halo (left edge of the next tile)
    Edges of the sequence are zeros ('same' conv padding).
    """
    B, C_in, L = x.shape
    NL = L // TL
    if pad == 0:
        return jnp.zeros((B * NL, C_in, 1), x.dtype)
    xt = x.reshape(B, C_in, NL, TL)
    z = jnp.zeros((B, C_in, 1, pad), x.dtype)
    left_halo = jnp.concatenate([z, xt[:, :, :NL - 1, TL - pad:]], axis=2)
    right_halo = jnp.concatenate([xt[:, :, 1:, :pad], z], axis=2)
    halo = jnp.concatenate([left_halo, right_halo], axis=-1)   # (B,C_in,NL,2p)
    halo = jnp.transpose(halo, (0, 2, 1, 3))                    # (B,NL,C_in,2p)
    return halo.reshape(B * NL, C_in, 2 * pad)


# ---------------------------------------------------------------------------
# Public entry point
# ---------------------------------------------------------------------------

def conv1d_pallas(x, weight, bias, *, dilation=1, tile_l=None, use_bf16=False):
    """x: (B, C_in, L); weight: (C_out, C_in, K) (weight_norm pre-folded);
    bias: (C_out,). Returns (B, C_out, L) in x's original dtype.

    tile_l=None -> auto (generation-aware). use_bf16=True casts x/weight to
    bf16 (f32 accumulate) to halve HBM traffic when the model tolerates it.
    """
    orig_dtype = x.dtype
    B, C_in, L = x.shape
    C_out, C_in_w, K = weight.shape
    assert C_in_w == C_in
    assert dilation * (K - 1) % 2 == 0, "requires even dilation*(K-1) ('same' conv)"
    pad = dilation * (K - 1) // 2

    if use_bf16:
        x = x.astype(jnp.bfloat16)
        weight = weight.astype(jnp.bfloat16)

    # Pad awkward L to a multiple of 128 (never fall back to one giant block).
    L_orig = L
    if L > 128 and L % 128 != 0:
        Lp = ((L + 127) // 128) * 128
        x = jnp.pad(x, ((0, 0), (0, 0), (0, Lp - L)))
        L = Lp

    vmem_limit = int(min(_tpu_vmem_bytes() * 3 // 4, 112 * 1024 * 1024))
    itemsize = jnp.dtype(x.dtype).itemsize
    bytes_per_col = (C_in + C_out) * itemsize
    min_tiles = 2 if B == 1 else 1          # keep both v7x TensorCores busy

    if tile_l is not None and L % tile_l == 0 and (tile_l % 128 == 0 or tile_l == L):
        TL = tile_l
    else:
        TL = _pick_tile_l(L, bytes_per_col, vmem_limit, min_tiles=min_tiles)
    assert pad < TL, "tile must be wider than the conv halo"
    NL = L // TL

    halo = _build_halos(x, TL, pad)                       # (B*NL, C_in, Hw)
    Hw = halo.shape[-1]
    w3 = jnp.transpose(weight, (2, 0, 1))                 # (K, C_out, C_in)
    b2 = bias.reshape(C_out, 1).astype(jnp.float32)

    kernel = functools.partial(_conv1d_kernel, K=K, dilation=dilation,
                               pad=pad, TL=TL, C_out=C_out)

    out = pl.pallas_call(
        kernel,
        out_shape=jax.ShapeDtypeStruct((B, C_out, L), orig_dtype),
        grid_spec=pltpu.PrefetchScalarGridSpec(
            num_scalar_prefetch=0,
            grid=(B, NL),
            in_specs=[
                # streamed input tile
                pl.BlockSpec((1, C_in, TL), lambda b, l: (b, 0, l)),
                # tiny VMEM-resident tensors (constant block index -> one DMA)
                pl.BlockSpec((B * NL, C_in, Hw), lambda b, l: (0, 0, 0)),
                pl.BlockSpec((K, C_out, C_in), lambda b, l: (0, 0, 0)),
                pl.BlockSpec((C_out, 1), lambda b, l: (0, 0)),
            ],
            out_specs=pl.BlockSpec((1, C_out, TL), lambda b, l: (b, 0, l)),
        ),
        compiler_params=pltpu.CompilerParams(
            dimension_semantics=("parallel", "parallel"),
            vmem_limit_bytes=vmem_limit,
        ),
    )(x, halo, w3, b2)

    if L != L_orig:
        out = out[:, :, :L_orig]
    return out


# ---------------------------------------------------------------------------
# Reference + synthetic params
# ---------------------------------------------------------------------------

def make_params(key, in_channels, out_channels, kernel_size):
    """Synthetic params mirroring the module (weight_norm: w = g * v / ||v||)."""
    kv, kb = jax.random.split(key)
    fan_in = in_channels * kernel_size
    v = jax.random.normal(kv, (out_channels, in_channels, kernel_size),
                          dtype=jnp.float32) * jnp.sqrt(2.0 / fan_in)
    norm = jnp.sqrt(jnp.sum(v * v, axis=(1, 2), keepdims=True))
    g = norm                                        # weight_norm default init
    weight = g * v / norm
    bound = 1.0 / jnp.sqrt(fan_in)
    bias = jax.random.uniform(kb, (out_channels,), dtype=jnp.float32,
                              minval=-bound, maxval=bound)
    return weight, bias


def conv_ref(x, weight, bias, *, dilation=1):
    """Pure-JAX reference (lax.conv_general_dilated)."""
    K = weight.shape[-1]
    pad = dilation * (K - 1) // 2
    out = jax.lax.conv_general_dilated(
        x, weight,
        window_strides=(1,),
        padding=[(pad, pad)],
        rhs_dilation=(dilation,),
        dimension_numbers=("NCH", "OIH", "NCH"),
        precision=jax.lax.Precision.HIGHEST,
    )
    return out + bias[None, :, None]


if __name__ == "__main__":
    key = jax.random.PRNGKey(0)

    # (B, C_in, C_out, L, K, dilation, tile_l)
    configs = [
        (2, 8, 8, 512, 3, 1, 128),    # multi-tile: exercises halo splicing
        (2, 4, 4, 16, 3, 1, None),    # tiny: whole-L block, non-128 lane width
        (1, 8, 16, 256, 3, 2, 128),   # dilation=2: wider halo, B==1
        (2, 8, 8, 512, 3, 1, None),   # auto tile selection
    ]

    for idx, (B, C_in, C_out, L, K, dilation, tile_l) in enumerate(configs):
        kx, kp, key = jax.random.split(key, 3)
        x = jax.random.normal(kx, (B, C_in, L), dtype=jnp.float32)
        weight, bias = make_params(kp, C_in, C_out, K)

        out = conv1d_pallas(x, weight, bias, dilation=dilation, tile_l=tile_l)
        out = jax.block_until_ready(out)

        ref = conv_ref(x, weight, bias, dilation=dilation)
        assert out.shape == (B, C_out, L), (idx, out.shape)
        assert jnp.allclose(out, ref, atol=1e-4, rtol=1e-4), \
            f"mismatch vs reference in config {idx}"

    print("KERNEL_OK")
</pallas_src>

<mosaic_0001>
module attributes {stable_mosaic.version = 11 : i64} {
  func.func @_conv1d_kernel(%arg0: i32, %arg1: i32, %arg2: memref<1x8x128xf32, #tpu.memory_space<vmem>>, %arg3: memref<8x8x2xf32, #tpu.memory_space<vmem>>, %arg4: memref<3x8x8xf32, #tpu.memory_space<vmem>>, %arg5: memref<8x1xf32, #tpu.memory_space<vmem>>, %arg6: memref<1x8x128xf32, #tpu.memory_space<vmem>>) attributes {dimension_semantics = [#tpu.dimension_semantics<parallel>, #tpu.dimension_semantics<parallel>], iteration_bounds = array<i64: 2, 4>, scalar_prefetch = 0 : i64, scratch_operands = 0 : i64, tpu.core_type = #tpu.core_type<tc>, window_params = [{transform_indices = @transform_0, window_bounds = array<i64: 1, 8, 128>}, {pipeline_mode = #tpu.pipeline_mode<synchronous>, transform_indices = @transform_1, window_bounds = array<i64: 8, 8, 2>}, {pipeline_mode = #tpu.pipeline_mode<synchronous>, transform_indices = @transform_2, window_bounds = array<i64: 3, 8, 8>}, {pipeline_mode = #tpu.pipeline_mode<synchronous>, transform_indices = @transform_3, window_bounds = array<i64: 8, 1>}, {transform_indices = @transform_4, window_bounds = array<i64: 1, 8, 128>}]} {
    %c0 = arith.constant 0 : index
    %c0_0 = arith.constant 0 : index
    %c0_1 = arith.constant 0 : index
    %0 = vector.load %arg2[%c0, %c0_0, %c0_1] : memref<1x8x128xf32, #tpu.memory_space<vmem>>, vector<1x8x128xf32>
    %1 = vector.shape_cast %0 : vector<1x8x128xf32> to vector<8x128xf32>
    %c4_i32 = arith.constant 4 : i32
    %2 = arith.muli %arg0, %c4_i32 : i32
    %3 = arith.addi %2, %arg1 : i32
    %4 = arith.index_cast %3 : i32 to index
    %c0_2 = arith.constant 0 : index
    %c0_3 = arith.constant 0 : index
    %5 = vector.load %arg3[%4, %c0_2, %c0_3] : memref<8x8x2xf32, #tpu.memory_space<vmem>>, vector<1x8x2xf32>
    %6 = vector.shape_cast %5 : vector<1x8x2xf32> to vector<8x2xf32>
    %7 = tpu.iota {dimensions = array<i32: 1>} : vector<8x128xi32>
    %cst = arith.constant 0.000000e+00 : f32
    %8 = vector.broadcast %cst : f32 to vector<8x128xf32>
    %c1_i32 = arith.constant 1 : i32
    %9 = tpu.dynamic_rotate %1 by %c1_i32 dim 1 : vector<8x128xf32>, i32 -> vector<8x128xf32>
    %10 = vector.extract_strided_slice %6 {offsets = [0, 0], sizes = [8, 1], strides = [1, 1]} : vector<8x2xf32> to vector<8x1xf32>
    %c0_i32 = arith.constant 0 : i32
    %11 = vector.broadcast %c0_i32 : i32 to vector<8x128xi32>
    %12 = arith.cmpi eq, %7, %11 : vector<8x128xi32>
    %13 = vector.shape_cast %10 : vector<8x1xf32> to vector<8x1xf32>
    %14 = vector.broadcast %13 : vector<8x1xf32> to vector<8x128xf32>
    %15 = arith.select %12, %14, %9 : vector<8x128xi1>, vector<8x128xf32>
    %c0_4 = arith.constant 0 : index
    %c0_5 = arith.constant 0 : index
    %c0_6 = arith.constant 0 : index
    %16 = vector.load %arg4[%c0_4, %c0_5, %c0_6] : memref<3x8x8xf32, #tpu.memory_space<vmem>>, vector<1x8x8xf32>
    %17 = vector.shape_cast %16 : vector<1x8x8xf32> to vector<8x8xf32>
    %cst_7 = arith.constant dense<0.000000e+00> : vector<8x128xf32>
    %18 = tpu.matmul %17, %15, %cst_7 {dimension_numbers = #tpu.dot_dimension_numbers<[1], [0], [0], [1], [0, 0, 1, 1], [], []>} : vector<8x8xf32>, vector<8x128xf32>, vector<8x128xf32> -> vector<8x128xf32>
    %19 = arith.addf %8, %18 : vector<8x128xf32>
    %c1 = arith.constant 1 : index
    %c0_8 = arith.constant 0 : index
    %c0_9 = arith.constant 0 : index
    %20 = vector.load %arg4[%c1, %c0_8, %c0_9] : memref<3x8x8xf32, #tpu.memory_space<vmem>>, vector<1x8x8xf32>
    %21 = vector.shape_cast %20 : vector<1x8x8xf32> to vector<8x8xf32>
    %cst_10 = arith.constant dense<0.000000e+00> : vector<8x128xf32>
    %22 = tpu.matmul %21, %1, %cst_10 {dimension_numbers = #tpu.dot_dimension_numbers<[1], [0], [0], [1], [0, 0, 1, 1], [], []>} : vector<8x8xf32>, vector<8x128xf32>, vector<8x128xf32> -> vector<8x128xf32>
    %23 = arith.addf %19, %22 : vector<8x128xf32>
    %c127_i32 = arith.constant 127 : i32
    %24 = tpu.dynamic_rotate %1 by %c127_i32 dim 1 : vector<8x128xf32>, i32 -> vector<8x128xf32>
    %25 = vector.extract_strided_slice %6 {offsets = [0, 1], sizes = [8, 1], strides = [1, 1]} : vector<8x2xf32> to vector<8x1xf32>
    %c127_i32_11 = arith.constant 127 : i32
    %26 = vector.broadcast %c127_i32_11 : i32 to vector<8x128xi32>
    %27 = arith.cmpi eq, %7, %26 : vector<8x128xi32>
    %28 = vector.shape_cast %25 : vector<8x1xf32> to vector<8x1xf32>
    %29 = vector.broadcast %28 : vector<8x1xf32> to vector<8x128xf32>
    %30 = arith.select %27, %29, %24 : vector<8x128xi1>, vector<8x128xf32>
    %c2 = arith.constant 2 : index
    %c0_12 = arith.constant 0 : index
    %c0_13 = arith.constant 0 : index
    %31 = vector.load %arg4[%c2, %c0_12, %c0_13] : memref<3x8x8xf32, #tpu.memory_space<vmem>>, vector<1x8x8xf32>
    %32 = vector.shape_cast %31 : vector<1x8x8xf32> to vector<8x8xf32>
    %cst_14 = arith.constant dense<0.000000e+00> : vector<8x128xf32>
    %33 = tpu.matmul %32, %30, %cst_14 {dimension_numbers = #tpu.dot_dimension_numbers<[1], [0], [0], [1], [0, 0, 1, 1], [], []>} : vector<8x8xf32>, vector<8x128xf32>, vector<8x128xf32> -> vector<8x128xf32>
    %34 = arith.addf %23, %33 : vector<8x128xf32>
    %c0_15 = arith.constant 0 : index
    %c0_16 = arith.constant 0 : index
    %35 = vector.load %arg5[%c0_15, %c0_16] : memref<8x1xf32, #tpu.memory_space<vmem>>, vector<8x1xf32>
    %36 = vector.broadcast %35 : vector<8x1xf32> to vector<8x128xf32>
    %37 = arith.addf %34, %36 : vector<8x128xf32>
    %c0_17 = arith.constant 0 : index
    %c0_18 = arith.constant 0 : index
    %c0_19 = arith.constant 0 : index
    %38 = vector.load %arg6[%c0_17, %c0_18, %c0_19] : memref<1x8x128xf32, #tpu.memory_space<vmem>>, vector<1x8x128xf32>
    %39 = vector.shape_cast %38 : vector<1x8x128xf32> to vector<8x128xf32>
    %40 = vector.shape_cast %37 : vector<8x128xf32> to vector<1x8x128xf32>
    tpu.vector_store %arg6[%c0_17, %c0_18, %c0_19], %40 {strides = array<i32>} : memref<1x8x128xf32, #tpu.memory_space<vmem>>, vector<1x8x128xf32>,
    return
  }
  func.func @transform_0(%arg0: i32, %arg1: i32) -> (i32, i32, i32) {
    %c0_i32 = arith.constant 0 : i32
    %c0_i32_0 = arith.constant 0 : i32
    return %arg0, %c0_i32, %arg1 : i32, i32, i32
  }
  func.func @transform_1(%arg0: i32, %arg1: i32) -> (i32, i32, i32) {
    %c0_i32 = arith.constant 0 : i32
    %c0_i32_0 = arith.constant 0 : i32
    %c0_i32_1 = arith.constant 0 : i32
    %c0_i32_2 = arith.constant 0 : i32
    return %c0_i32, %c0_i32_0, %c0_i32_1 : i32, i32, i32
  }
  func.func @transform_2(%arg0: i32, %arg1: i32) -> (i32, i32, i32) {
    %c0_i32 = arith.constant 0 : i32
    %c0_i32_0 = arith.constant 0 : i32
    %c0_i32_1 = arith.constant 0 : i32
    %c0_i32_2 = arith.constant 0 : i32
    return %c0_i32, %c0_i32_0, %c0_i32_1 : i32, i32, i32
  }
  func.func @transform_3(%arg0: i32, %arg1: i32) -> (i32, i32) {
    %c0_i32 = arith.constant 0 : i32
    %c0_i32_0 = arith.constant 0 : i32
    %c0_i32_1 = arith.constant 0 : i32
    return %c0_i32, %c0_i32_0 : i32, i32
  }
  func.func @transform_4(%arg0: i32, %arg1: i32) -> (i32, i32, i32) {
    %c0_i32 = arith.constant 0 : i32
    %c0_i32_0 = arith.constant 0 : i32
    return %arg0, %c0_i32, %arg1 : i32, i32, i32
  }
}

</mosaic_0001>

<bundles_post_ra>
// kernel: tpu_custom_call.1
= control target key start
LH: loop header
LB: loop body
LE: loop exit
PB: predicated region body
PF: predicated region fallthrough
CT: control target
= control target key end

     0   :  { %9 = vsyncpa [#allocation3], 0  ;;  %s990_s0 = inlined_call_operand.vmem [shape: f32[2,8,512], index: 0, kind: input, shape index: {}]   ;;  %s991_s1 = inlined_call_operand.vmem [shape: f32[8,8,2], index: 1, kind: input, shape index: {}]   ;;  %s992_s2 = inlined_call_operand.vmem [shape: f32[3,8,8], index: 2, kind: input, shape index: {}]   ;;  %s993_s3 = inlined_call_operand.vmem [shape: f32[8,1], index: 3, kind: input, shape index: {}]   ;;  %s994_s4 = inlined_call_operand.hbm [shape: f32[2,8,512], index: 4, kind: output, shape index: {}]  }
   0x1   :  { %11 = vsyncpa [#allocation3 + $0x1], 0  ;;  %s828_s15 = smov 0   ;;  %s830_s16 = smov 0  }
   0x2   :  { %s832_s17 = smov 0   ;;  %s834_s18 = smov 0  }
   0x3   :  { %s836_s19 = smov 0   ;;  %s838_s20 = smov 0  }
   0x4   :  { %s840_s21 = smov 0   ;;  %s842_s22 = smov 0  }
   0x5 LB: > { %s578_s23 = sadd.s32 4294967295, %s794_s22   ;;  %s579_s24 = sadd.s32 4294967294, %s794_s22   ;;  %s794_s22 = sphi %s842_s22, %s17_s22   ;;  %s790_s21 = sphi %s840_s21, %s1003_s21   ;;  %s786_s20 = sphi %s838_s20, %s1002_s20   ;;  %s782_s19 = sphi %s836_s19, %s1001_s19   ;;  %s778_s18 = sphi %s834_s18, %s1000_s18   ;;  %s774_s17 = sphi %s832_s17, %s999_s17   ;;  %s770_s16 = sphi %s830_s16, %s998_s16   ;;  %s766_s15 = sphi %s828_s15, %s997_s15  }
   0x6   : > { %s26_s25 = sadd.s32 1, %s786_s20  ;;  %s29_s26 = sadd.s32 1, %s790_s21 }
   0x7   : > { %p27_p0 = scmp.ge.s32.totalorder %s26_s25, 4  ;;  %p139_p1 = scmp.ne.s32.totalorder %s774_s17, %s770_s16 }
   0x8   : > { %p140_p2 = scmp.eq.s32.totalorder %s578_s23, 7  ;;  %p145_p5 = scmp.ne.s32.totalorder %s770_s16, %s766_s15 }
   0x9   : > { %s1005_s25 = smov (%p27_p0, %s26_s25), 0  ;;  %s1007_s26 = smov (!%p27_p0, %s29_s26), %s790_s21 }
   0xa   : > { %s125_s27 = ssub.s32 %s786_s20, %s1005_s25  ;;  %p879_p3 = por %p140_p2, %p139_p1 }
   0xb   : > { %p31_p4 = scmp.ge.s32.totalorder %s1007_s26, 2  ;;  %p146_p6 = scmp.eq.s32.totalorder %s579_s24, 7 }
   0xc   : > { %p582_p7 = scmp.ge.s32.totalorder %s794_s22, 1  ;;  %p184_p9 = scmp.lt.s32.totalorder %s794_s22, 9 }
   0xd   : > { %s1009_s26 = smov (%p31_p4, %s1007_s26), 0  ;;  %p888_p8 = por %p146_p6, %p145_p5 }
   0xe   : > { %s124_s30 = ssub.s32 %s790_s21, %s1009_s26  ;;  %s129_s5 = sadd.s32 1, %s774_s17 }
   0xf   : > { %s126_s6 = sor.u32 %s125_s27, %s124_s30  ;;  %p185_p10 = pnand %p582_p7, %p184_p9 }
  0x10   : > { %p127_p11 = scmp.eq.s32.totalorder %s126_s6, 0  ;;  %s586_s8 = sshll.u32 (!%p185_p10), %s782_s19, 2  ;;  %v796_v0 = vmov (!%p185_p10), 0   ;;  %v797_v2 = vmov (!%p185_p10), 0.0   ;;  %vm798_vm0 = vmmov (!%p185_p10), 0   ;;  %v799_v3 = vmov (!%p185_p10), 1  }
  0x11   : > { %188 = sbr.rel (%p185_p10) target bundleno = 388 (0x184), region = 36  ;;  %p213_p12 = scmp.lt.s32.totalorder (!%p185_p10), %s782_s19, 1  ;;  %696 = vset.pattern.permute.xlu0 (!%p185_p10), %v796_v0  ;;  %698 = vset.pattern.permute.xlu1 (!%p185_p10), %v796_v0  ;;  %v588_v4 = vld [vmem:[%s992_s2 + $0x8] sm:$0xff] (!%p185_p10)  ;;  %vm241_vm1 = vcmask (!%p185_p10), 64512   ;;  %v472_v6 = vld [vmem:[%s993_s3] sm:$0xff] (!%p185_p10)  ;;  %v227_v7 = vlaneseq (!%p185_p10)  ;;  %v591_v15 = vld [vmem:[%s992_s2 + $0x10] sm:$0xff] (!%p185_p10) }
  0x12   : > { %s897_s7 = scalar_select %p127_p11, %s774_s17, %s129_s5  }
  0x13   : > { %s902_s9 = sadd.s32 (!%p185_p10), %s778_s18, %s586_s8  ;;  %p215_p13 = scmp.lt.s32.totalorder (!%p185_p10), %s778_s18, 3  ;;  %609 = vmatprep.subr.mxu1 (!%p185_p10), %v797_v2  ;;  %604 = vmatprep.subr.mxu0 (!%p185_p10), %v797_v2  ;;  %v228_v8 = vand.u32 (!%p185_p10), 127, %v227_v7  ;;  %v238_v11 = vld [vmem:[%s992_s2] sm:$0xff] (!%p185_p10) }
  0x14   : > { %s587_s10 = sshll.u32 (!%p185_p10), %s902_s9, 3  ;;  %606 = vmatprep.mubr.msk.f32.mxu0 (!%p185_p10), %vm798_vm0, %v797_v2  ;;  %611 = vmatprep.mubr.msk.f32.mxu1 (!%p185_p10), %vm798_vm0, %v797_v2  ;;  %s595_s30 = sshll.u32 (!%p185_p10), %s902_s9, 7 }
  0x15   : > { %s225_s13 = scalar_lea.vmem (!%p185_p10), %s991_s1, %s587_s10  ;;  %vm231_vm2 = vcmp.eq.s32.totalorder (!%p185_p10), %v228_v8, 0  ;;  %vm390_vm3 = vcmp.eq.s32.totalorder (!%p185_p10), %v228_v8, 127  ;;  %s802_s11 = smov (!%p185_p10), [#allocation2]  }
  0x16   : > { %v226_v1 = vld [vmem:[%s225_s13] sm:$0xff] (!%p185_p10)  ;;  %s704_s12 = sshll.u32 (!%p185_p10), %s802_s11, 4  ;;  %s705_s12 = int_to_ptr.vmem [resolvable:$false] %s704_s12 }
  0x17   : > { %234 = vperm.xlu0 (!%p185_p10), %696, %v226_v1   ;;  %s706_s13 = scalar_lea.vmem (!%p185_p10), %s705_s12, 256 }
  0x18   : > { %s1011_s19 = smov (!%p213_p12, %s782_s19), 1  ;;  %s1013_s18 = smov (!%p215_p13, %s778_s18), 3 }
  0x19   : > { %s584_s14 = sshll.u32 %s1011_s19, 2  ;;  %s800_s19 = smov 1  }
  0x1a   : > { %s218_s23 = sadd.s32 %s584_s14, %s1013_s18  ;;  %s801_s18 = smov 127  }
  0x1b   : > { %s585_s24 = sshll.u32 %s218_s23, 3  ;;  %697 = vset.pattern.permute.xlu0 %v799_v3 }
  0x1c   : > { %s220_s5 = scalar_lea.vmem %s990_s0, %s585_s24  ;;  %392 = vperm.xlu0 %697, %v226_v1   ;;  %s210_s24 = sand.u32 1, %s770_s16  }
  0x1d   : > { %v221_v5 = vld [vmem:[%s220_s5] sm:$0xff]  ;;  %s583_s27 = sshll.u32 %s210_s24, 3  ;;  %s481_s10 = scalar_lea.sflag [#allocation3], %s210_s24 }
  0x1e   : > { %229 = vrot.lane.b32.xlu1 %v221_v5, %s800_s19  ;;  %605 = vmatpush3.msra.mxu0 %v221_v5  ;;  %s212_s5 = scalar_lea.vmem [#allocation2], %s583_s27 }
  0x1f   : > { %607 = vmatmul.mubr.msk.f32.vlgmr.msra.gmra.mrb[0].mxu0 %vm241_vm1, %v588_v4  ;;  %614 = vmatprep.subr.mxu0 %v797_v2  ;;  %s496_s6 = sshll.u32 %s212_s5, 4  ;;  %s939_s6 = int_to_ptr.vmem [resolvable:$true] %s496_s6 }
  0x20   : > { %616 = vmatprep.mubr.msk.f32.mxu0 %vm798_vm0, %v797_v2  ;;  %699 = vset.pattern.permute.xlu0 %v796_v0  ;;  %s700_s9 = scalar_lea.vmem %s939_s6, 128  ;;  %p707_p4 = scmp.lt.s32.totalorder %s939_s6, %s705_s12 }
  0x21   : > { %p701_p0 = scmp.ne.s32.totalorder %s939_s6, %s700_s9  ;;  %p708_p5 = scmp.lt.s32.totalorder %s706_s13, %s700_s9 }
  0x22   : > { %388 = vrot.lane.b32.xlu1 %v221_v5, %s801_s18  ;;  %s937_s18 = scalar_lea.hbm %s994_s4, %s595_s30 }
  0x23   : > { %p702_p1 = pnand %p701_p0, %p879_p3  ;;  %p709_p6 = por %p708_p5, %p707_p4 }
  0x25   : > { %p703_p2 = pneg %p702_p1 }
  0x26   : > { %475 = vperm.xlu1 %698, %v472_v6  }
  0x27   : > { %p710_p7 = pnand %p709_p6, %p703_p2 }
  0x90   : > { %v230_v9 = vpop.permute.xlu1 %229 }
  0x94   : > { %v389_v13 = vpop.permute.xlu1 %388 }
  0x96   : > { %v235_v10 = vpop.permute.xlu0 %234 }
  0x97   : > { %v237_v12 = vsel %vm231_vm2, %v235_v10, %v230_v9 }
  0x98   : > { %610 = vmatpush3.msra.mxu1 %v237_v12 }
  0x99   : > { %612 = vmatmul.mubr.msk.f32.vlgmr.msra.gmra.mrb[0].mxu1 %vm241_vm1, %v238_v11 }
  0x9b   : > { %v393_v14 = vpop.permute.xlu0 %392 }
  0x9c   : > { %v395_v16 = vsel %vm390_vm3, %v393_v14, %v389_v13 }
  0x9d   : > { %615 = vmatpush3.msra.mxu0 %v395_v16 }
  0x9e   : > { %617 = vmatmul.mubr.msk.f32.vlgmr.msra.gmra.mrb[2].mxu0 %vm241_vm1, %v591_v15 }
  0xa5   : > { %v476_v23 = vpop.permute.xlu1 %475 }
  0xf2   : > { %v311_v17 = vpop.f32.mrb[0].mxu0 }
  0xf3   : > { %v608_v18 = vpop.f32.mrb[1].mxu0 }
 0x16c   : > { %v384_v19 = vpop.f32.mrb[0].mxu1 }
 0x16d   : > { %v385_v20 = vadd.f32 %v384_v19, %v311_v17  ;;  %v613_v21 = vpop.f32.mrb[1].mxu1 }
 0x171   : > { %v467_v22 = vpop.f32.mrb[2].mxu0 }
 0x172   : > { %v471_v24 = vadd.f32 %v467_v22, %v385_v20  ;;  %v618_v25 = vpop.f32.mrb[3].mxu0 }
 0x174   : > { %v478_v26 = vadd.f32 %v476_v23, %v471_v24 }
 0x176   : > { %479 = vst [vmem:[%s212_s5] sm:$0xff] %v478_v26 }
 0x177   : > { %713 = shalt.err (!%p710_p7)
}
 0x178   : > { %s714_s14 = scalar_lea.hbm %s937_s18, 128  ;;  %s718_s27 = scalar_lea.hbm %s994_s4, 1024 }
 0x179   : > { %p715_p9 = scmp.ne.s32.totalorder %s937_s18, %s714_s14  ;;  %p719_p12 = scmp.lt.u32.totalorder %s937_s18, %s994_s4 }
 0x17a   : > { %p720_p13 = scmp.lt.u32.totalorder %s718_s27, %s714_s14  ;;  %p722_p1 = scmp.lt.u32.totalorder %s714_s14, %s937_s18 }
 0x17b   : > { %p716_p10 = pnand %p715_p9, %p879_p3 }
 0x17c   : > { %p721_p0 = por %p720_p13, %p719_p12 }
 0x17d   : > { %p717_p11 = pneg %p716_p10 }
 0x17e   : > { %p723_p2 = por %p722_p1, %p721_p0 }
 0x180   : > { %p724_p4 = pnand %p723_p2, %p717_p11 }
 0x182   : > { %727 = shalt.err (!%p724_p4)
}
 0x183   : > { %619 = dma.vmem_to_hbm [thread:$0]  (%p879_p3), %s939_s6, 128, %s937_s18, %s481_s10  }
 0x184 PF: > { %p625_p5 = scmp.ge.s32.totalorder %s794_s22, 2  ;;  %s508_s8 = sand.u32 1, %s766_s15  }
 0x185   : > { %s509_s19 = scalar_lea.sflag [#allocation3], %s508_s8 }
 0x186   : > { %p622_p6 = pnand %p625_p5, %p888_p8 }
 0x188   : > { %761 = dma.done.wait (!%p622_p6), %s509_s19, 128  }
 0x189   : > { %763 = vsyncadd (!%p622_p6), %s509_s19, 4294967168  ;;  %s17_s22 = sadd.s32 1, %s794_s22   ;;  %s997_s15 = smov %s770_s16 }
 0x18a   : > { %p14_p7 = scmp.ge.s32.totalorder %s17_s22, 10   ;;  %s998_s16 = smov %s774_s17 }
 0x18b   : > { %s999_s17 = smov %s897_s7  ;;  %s1000_s18 = smov %s786_s20 }
 0x18c   : > { %s1001_s19 = smov %s790_s21  ;;  %s1002_s20 = smov %s1005_s25 }
 0x18d   : > { %s1003_s21 = smov %s1009_s26  ;;  %16 = sbr.rel (!%p14_p7) target bundleno = 5 (0x5), region = 74 }
 0x194   :  { %514 = vsyncpa [#allocation3], 1 }
 0x195   :  { %516 = vsyncpa [#allocation3 + $0x1], 1 }

</bundles_post_ra>
